<compile_context>
chip_gen: v6e
topology: v6e:2x2x1
jax: 0.10.0
libtpu: 0.0.40
codegen_flags: <defaults>
</compile_context>

<pallas_src>
import functools

import jax
import jax.numpy as jnp
from jax.experimental import pallas as pl
from jax.experimental.pallas import tpu as pltpu

_LANE = 128
_SUBLANE = 8
_GRAIN = _SUBLANE * _LANE          # 1024 elements = one f32 vreg
_TM = 8192                         # block rows per grid step (8 MiB/step @ f32)
_CHUNK = 512                       # rows per in-kernel accumulation slice


def _sse_kernel(e1_ref, e2_ref, out_ref, acc_ref, *, tm):
    """Accumulates sum((e1 - e2)**2) for one block range into an (8,128) partial."""
    i = pl.program_id(1)           # step within this row-split ("arbitrary")

    @pl.when(i == 0)
    def _():
        acc_ref[...] = jnp.zeros_like(acc_ref)

    def accum_slice(row_off, size):
        # Static slice offsets/sizes (all multiples of 8 rows): cheap views,
        # ~256 KiB f32 temporaries per chunk, one wide VALU add into the
        # resident VMEM accumulator.
        x1 = e1_ref[row_off:row_off + size, :].astype(jnp.float32)
        x2 = e2_ref[row_off:row_off + size, :].astype(jnp.float32)
        d = x1 - x2
        acc_ref[0:size, :] += d * d

    n_full = tm // _CHUNK
    rem = tm - n_full * _CHUNK
    for j in range(n_full):                       # fully unrolled, static offsets
        accum_slice(j * _CHUNK, _CHUNK)
    if rem > 0:                                   # tm < CHUNK (small inputs) only
        accum_slice(n_full * _CHUNK, rem)

    @pl.when(i == pl.num_programs(1) - 1)
    def _():
        # One cheap fold of the wide accumulator into the (8,128) output block.
        out_ref[...] = jnp.sum(
            acc_ref[...].reshape(_CHUNK // _SUBLANE, _SUBLANE, _LANE), axis=0
        )


def exp_loss(embedding_1, embedding_2):
    """Pallas equivalent of ExpLoss.forward: mean squared error (scalar f32)."""
    assert embedding_1.shape == embedding_2.shape
    n = embedding_1.size
    assert n > 0

    f1 = embedding_1.reshape(-1)
    f2 = embedding_2.reshape(-1)

    # Rows the kernel covers: whole (tm, 128) blocks only (rows_all is a
    # multiple of 8 by construction, so blocks are always (8,128)-aligned).
    rows_all = (n // _GRAIN) * _SUBLANE
    if rows_all <= _TM:
        tm = rows_all
        nblocks = 1 if rows_all > 0 else 0
    else:
        tm = _TM
        nblocks = rows_all // _TM
    m_k = nblocks * tm * _LANE                     # elements covered by kernel

    total = jnp.float32(0.0)

    if m_k > 0:
        x1 = f1[:m_k].reshape(nblocks * tm, _LANE)  # no-copy reshape when m_k == n
        x2 = f2[:m_k].reshape(nblocks * tm, _LANE)

        # 2-way row split only when it needs no duplicated / clamped blocks:
        # a real 2x on dual-TensorCore chips (v7x), a harmless serial loop on
        # single-core v5e / v6e.
        nsplit = 2 if (nblocks >= 2 and nblocks % 2 == 0) else 1
        steps = nblocks // nsplit

        elem_bytes = x1.dtype.itemsize
        cost = pl.CostEstimate(
            flops=3 * m_k,
            transcendentals=0,
            bytes_accessed=2 * m_k * elem_bytes + nsplit * _SUBLANE * _LANE * 4,
        )

        partials = pl.pallas_call(
            functools.partial(_sse_kernel, tm=tm),
            out_shape=jax.ShapeDtypeStruct((nsplit * _SUBLANE, _LANE), jnp.float32),
            grid_spec=pltpu.PrefetchScalarGridSpec(
                num_scalar_prefetch=0,
                grid=(nsplit, steps),
                in_specs=[
                    pl.BlockSpec((tm, _LANE), lambda c, i: (c * steps + i, 0)),
                    pl.BlockSpec((tm, _LANE), lambda c, i: (c * steps + i, 0)),
                ],
                out_specs=pl.BlockSpec((_SUBLANE, _LANE), lambda c, i: (c, 0)),
                scratch_shapes=[pltpu.VMEM((_CHUNK, _LANE), jnp.float32)],
            ),
            compiler_params=pltpu.CompilerParams(
                dimension_semantics=("parallel", "arbitrary"),
                vmem_limit_bytes=32 * 1024 * 1024,
            ),
            cost_estimate=cost,
        )(x1, x2)

        # Tiny (nsplit*8, 128) epilogue reduce.
        total = jnp.sum(partials)

    if m_k < n:
        # Remainder rows + sub-1024-element tail: one fused jnp pass is cheaper
        # than a masked in-kernel path or a second pallas_call launch.
        t = f1[m_k:].astype(jnp.float32) - f2[m_k:].astype(jnp.float32)
        total = total + jnp.sum(t * t)

    return total / jnp.float32(n)
    # TODO(synk): ExpLoss.item_ / .item() host-side caching (a stateful Python
    # side effect) has no kernel equivalent and is intentionally not modeled.


if __name__ == "__main__":
    key = jax.random.PRNGKey(0)
    k1, k2 = jax.random.split(key)

    # Small embeddings consistent with a CLIP-style usage: (batch, C, H, W).
    shape = (2, 4, 16, 16)
    e1 = jax.random.normal(k1, shape, dtype=jnp.float32)
    e2 = jax.random.normal(k2, shape, dtype=jnp.float32)
    loss = exp_loss(e1, e2)
    jax.block_until_ready(loss)
    ref = jnp.mean((e1 - e2) ** 2)
    assert jnp.allclose(loss, ref, rtol=1e-5, atol=1e-6), (loss, ref)

    # Multi-chunk single-block path (2048 rows -> 4 in-kernel chunks).
    k3, k4 = jax.random.split(k2)
    shape_big = (4, 64, 32, 32)
    b1 = jax.random.normal(k3, shape_big, dtype=jnp.float32)
    b2 = jax.random.normal(k4, shape_big, dtype=jnp.float32)
    loss_big = exp_loss(b1, b2)
    jax.block_until_ready(loss_big)
    ref_big = jnp.mean((b1 - b2) ** 2)
    assert jnp.allclose(loss_big, ref_big, rtol=1e-5, atol=1e-6), (loss_big, ref_big)

    # Unaligned-tail path (n = 1155 -> 1024-element kernel prefix + jnp tail).
    k5, k6 = jax.random.split(k4)
    shape_odd = (3, 5, 7, 11)
    o1 = jax.random.normal(k5, shape_odd, dtype=jnp.float32)
    o2 = jax.random.normal(k6, shape_odd, dtype=jnp.float32)
    loss_odd = exp_loss(o1, o2)
    jax.block_until_ready(loss_odd)
    ref_odd = jnp.mean((o1 - o2) ** 2)
    assert jnp.allclose(loss_odd, ref_odd, rtol=1e-5, atol=1e-6), (loss_odd, ref_odd)

    # Exactly two full TM blocks -> exercises the 2-way "parallel" split.
    k7, k8 = jax.random.split(k6)
    s1 = jax.random.normal(k7, (2 * _TM, _LANE), dtype=jnp.float32)
    s2 = jax.random.normal(k8, (2 * _TM, _LANE), dtype=jnp.float32)
    loss_split = exp_loss(s1, s2)
    jax.block_until_ready(loss_split)
    ref_split = jnp.mean((s1 - s2) ** 2)
    assert jnp.allclose(loss_split, ref_split, rtol=1e-5, atol=1e-6), (
        loss_split, ref_split)

    # Odd block count + sub-block remainder -> multi-step accumulator + jnp tail.
    k9, k10 = jax.random.split(k8)
    n_rem = 3 * _TM * _LANE + 1155
    r1 = jax.random.normal(k9, (n_rem,), dtype=jnp.float32)
    r2 = jax.random.normal(k10, (n_rem,), dtype=jnp.float32)
    loss_rem = exp_loss(r1, r2)
    jax.block_until_ready(loss_rem)
    ref_rem = jnp.mean((r1 - r2) ** 2)
    assert jnp.allclose(loss_rem, ref_rem, rtol=1e-5, atol=1e-6), (loss_rem, ref_rem)

    print("KERNEL_OK")
</pallas_src>

<mosaic_0001>
module attributes {stable_mosaic.version = 11 : i64} {
  func.func @_sse_kernel(%arg0: i32, %arg1: i32, %arg2: memref<16x128xf32, #tpu.memory_space<vmem>>, %arg3: memref<16x128xf32, #tpu.memory_space<vmem>>, %arg4: memref<8x128xf32, #tpu.memory_space<vmem>>, %arg5: memref<512x128xf32, #tpu.memory_space<vmem>>) attributes {dimension_semantics = [#tpu.dimension_semantics<parallel>, #tpu.dimension_semantics<arbitrary>], iteration_bounds = array<i64: 1, 1>, scalar_prefetch = 0 : i64, scratch_operands = 1 : i64, tpu.core_type = #tpu.core_type<tc>, window_params = [{transform_indices = @transform_0, window_bounds = array<i64: 16, 128>}, {transform_indices = @transform_1, window_bounds = array<i64: 16, 128>}, {transform_indices = @transform_2, window_bounds = array<i64: 8, 128>}]} {
    %c0_i32 = arith.constant 0 : i32
    %0 = arith.cmpi eq, %arg1, %c0_i32 : i32
    %1 = arith.extui %0 : i1 to i32
    %c0_i32_0 = arith.constant 0 : i32
    %2 = arith.cmpi ne, %1, %c0_i32_0 : i32
    scf.if %2 {
      %cst = arith.constant 0.000000e+00 : f32
      %13 = vector.broadcast %cst : f32 to vector<512x128xf32>
      %c0_10 = arith.constant 0 : index
      %c0_11 = arith.constant 0 : index
      %14 = vector.load %arg5[%c0_10, %c0_11] : memref<512x128xf32, #tpu.memory_space<vmem>>, vector<512x128xf32>
      tpu.vector_store %arg5[%c0_10, %c0_11], %13 {strides = array<i32>} : memref<512x128xf32, #tpu.memory_space<vmem>>, vector<512x128xf32>,
    } else {
    }
    %c0 = arith.constant 0 : index
    %c0_1 = arith.constant 0 : index
    %3 = vector.load %arg2[%c0, %c0_1] : memref<16x128xf32, #tpu.memory_space<vmem>>, vector<16x128xf32>
    %c0_2 = arith.constant 0 : index
    %c0_3 = arith.constant 0 : index
    %4 = vector.load %arg3[%c0_2, %c0_3] : memref<16x128xf32, #tpu.memory_space<vmem>>, vector<16x128xf32>
    %5 = arith.subf %3, %4 : vector<16x128xf32>
    %c0_4 = arith.constant 0 : index
    %c0_5 = arith.constant 0 : index
    %6 = vector.load %arg5[%c0_4, %c0_5] : memref<512x128xf32, #tpu.memory_space<vmem>>, vector<16x128xf32>
    %7 = arith.mulf %5, %5 : vector<16x128xf32>
    %8 = arith.addf %6, %7 : vector<16x128xf32>
    %c0_6 = arith.constant 0 : index
    %c0_7 = arith.constant 0 : index
    %9 = vector.load %arg5[%c0_6, %c0_7] : memref<512x128xf32, #tpu.memory_space<vmem>>, vector<16x128xf32>
    tpu.vector_store %arg5[%c0_6, %c0_7], %8 {strides = array<i32>} : memref<512x128xf32, #tpu.memory_space<vmem>>, vector<16x128xf32>,
    %c0_i32_8 = arith.constant 0 : i32
    %10 = arith.cmpi eq, %arg1, %c0_i32_8 : i32
    %11 = arith.extui %10 : i1 to i32
    %c0_i32_9 = arith.constant 0 : i32
    %12 = arith.cmpi ne, %11, %c0_i32_9 : i32
    scf.if %12 {
      %c0_10 = arith.constant 0 : index
      %c0_11 = arith.constant 0 : index
      %13 = vector.load %arg5[%c0_10, %c0_11] : memref<512x128xf32, #tpu.memory_space<vmem>>, vector<512x128xf32>
      %14 = vector.shape_cast %13 : vector<512x128xf32> to vector<64x8x128xf32>
      %cst = arith.constant dense<0.000000e+00> : vector<8x128xf32>
      %15 = vector.multi_reduction <add>, %14, %cst [0] : vector<64x8x128xf32> to vector<8x128xf32>
      %c0_12 = arith.constant 0 : index
      %c0_13 = arith.constant 0 : index
      %16 = vector.load %arg4[%c0_12, %c0_13] : memref<8x128xf32, #tpu.memory_space<vmem>>, vector<8x128xf32>
      tpu.vector_store %arg4[%c0_12, %c0_13], %15 {strides = array<i32>} : memref<8x128xf32, #tpu.memory_space<vmem>>, vector<8x128xf32>,
    } else {
    }
    return
  }
  func.func @transform_0(%arg0: i32, %arg1: i32) -> (i32, i32) {
    %c1_i32 = arith.constant 1 : i32
    %0 = arith.muli %arg0, %c1_i32 : i32
    %1 = arith.addi %0, %arg1 : i32
    %c0_i32 = arith.constant 0 : i32
    %c0_i32_0 = arith.constant 0 : i32
    return %1, %c0_i32 : i32, i32
  }
  func.func @transform_1(%arg0: i32, %arg1: i32) -> (i32, i32) {
    %c1_i32 = arith.constant 1 : i32
    %0 = arith.muli %arg0, %c1_i32 : i32
    %1 = arith.addi %0, %arg1 : i32
    %c0_i32 = arith.constant 0 : i32
    %c0_i32_0 = arith.constant 0 : i32
    return %1, %c0_i32 : i32, i32
  }
  func.func @transform_2(%arg0: i32, %arg1: i32) -> (i32, i32) {
    %c0_i32 = arith.constant 0 : i32
    %c0_i32_0 = arith.constant 0 : i32
    return %arg0, %c0_i32 : i32, i32
  }
}

</mosaic_0001>

<bundles_post_ra>
// kernel: tpu_custom_call.1
= control target key start
LH: loop header
LB: loop body
LE: loop exit
PB: predicated region body
PF: predicated region fallthrough
CT: control target
= control target key end

     0   :  { %7 = vsyncpa [#allocation4], 0  ;;  %s381_s0 = inlined_call_operand.hbm [shape: f32[16,128], index: 0, kind: input, shape index: {}]   ;;  %s382_s1 = inlined_call_operand.hbm [shape: f32[16,128], index: 1, kind: input, shape index: {}]   ;;  %s383_s2 = inlined_call_operand.hbm [shape: f32[8,128], index: 2, kind: output, shape index: {}]  }
   0x1   :  { %8 = vsyncpa [#allocation7], 0 }
   0x2   :  { %9 = vsyncpa [#allocation5], 0  ;;  %s352_s9 = smov [#allocation3]  }
   0x3   :  { %s19_s10 = sshll.u32 %s352_s9, 4  ;;  %s20_s10 = int_to_ptr.vmem [resolvable:$true] %s19_s10 }
   0x4   :  { %s294_s11 = scalar_lea.vmem %s20_s10, 256  ;;  %p299_p1 = scmp.lt.s32.totalorder %s20_s10, %s20_s10 }
   0x5   :  { %p295_p0 = scmp.ne.s32.totalorder %s20_s10, %s294_s11  ;;  %p300_p2 = scmp.lt.s32.totalorder %s294_s11, %s294_s11 }
   0x7   :  { %p301_p3 = por %p300_p2, %p299_p1 }
   0x9   :  { %p302_p4 = pnand %p301_p3, %p295_p0 }
   0xb   :  { %305 = shalt.err (!%p302_p4)
}
   0xc   :  { %s353_s12 = smov 128   ;;  %s354_s13 = smov 8  }
   0xd   :  { %25 = dma.hbm_to_vmem [thread:$0]  %s381_s0, 256, %s20_s10, [#allocation4], %s353_s12, %s353_s12, %s354_s13  }
   0xe   :  { %s355_s16 = smov [#allocation6]  }
   0xf   :  { %s35_s17 = sshll.u32 %s355_s16, 4  ;;  %s36_s17 = int_to_ptr.vmem [resolvable:$true] %s35_s17 }
  0x10   :  { %s314_s18 = scalar_lea.vmem %s36_s17, 256  ;;  %p319_p6 = scmp.lt.s32.totalorder %s36_s17, %s36_s17 }
  0x11   :  { %p315_p5 = scmp.ne.s32.totalorder %s36_s17, %s314_s18  ;;  %p320_p7 = scmp.lt.s32.totalorder %s314_s18, %s314_s18 }
  0x13   :  { %p321_p8 = por %p320_p7, %p319_p6 }
  0x15   :  { %p322_p9 = pnand %p321_p8, %p315_p5 }
  0x17   :  { %325 = shalt.err (!%p322_p9)
}
  0x18   :  { %41 = dma.hbm_to_vmem [thread:$0]  %s382_s1, 256, %s36_s17, [#allocation7], %s353_s12, %s353_s12, %s354_s13  }
  0x19   :  { %346 = dma.done.wait [#allocation4], 256  }
  0x1a   :  { %347 = vsyncadd [#allocation4], 4294967040 }
  0x1b   :  { %348 = dma.done.wait [#allocation7], 256  }
  0x1c   :  { %349 = vsyncadd [#allocation7], 4294967040  ;;  %v120_v0 = vld [vmem:[#allocation3] sm:$0xff]  ;;  %v121_v1 = vld [vmem:[#allocation3 + $0x8] sm:$0xff]  ;;  %s356_s0 = smov [#allocation8]  }
  0x1d   :  { %v122_v2 = vld [vmem:[#allocation6] sm:$0xff]  ;;  %v123_v3 = vld [vmem:[#allocation6 + $0x8] sm:$0xff]  ;;  %s271_s21 = sshll.u32 %s356_s0, 4  ;;  %s272_s21 = int_to_ptr.vmem [resolvable:$true] %s271_s21 }
  0x1e   :  { %v124_v4 = vsub.f32 %v120_v0, %v122_v2  ;;  %v125_v5 = vsub.f32 %v121_v1, %v123_v3  ;;  %s326_s22 = scalar_lea.vmem %s272_s21, 128  ;;  %p331_p11 = scmp.lt.s32.totalorder %s272_s21, %s272_s21 }
  0x1f   :  { %p327_p10 = scmp.ne.s32.totalorder %s272_s21, %s326_s22  ;;  %p332_p12 = scmp.lt.s32.totalorder %s326_s22, %s326_s22 }
  0x20   :  { %v128_v6 = vmul.f32 %v124_v4, %v124_v4  ;;  %v129_v7 = vmul.f32 %v125_v5, %v125_v5 }
  0x21   :  { %p333_p13 = por %p332_p12, %p331_p11 }
  0x22   :  { %v201_v8 = vadd.f32 %v129_v7, %v128_v6 }
  0x23   :  { %p334_p0 = pnand %p333_p13, %p327_p10 }
  0x24   :  { %264 = vst [vmem:[#allocation8] sm:$0xff] %v201_v8 }
  0x25   :  { %337 = shalt.err (!%p334_p0)
}
  0x26   :  { %274 = dma.vmem_to_hbm [thread:$0]  %s272_s21, 128, %s383_s2, [#allocation5]  }
  0x27   :  { %350 = dma.done.wait [#allocation5], 128  }
  0x28   :  { %351 = vsyncadd [#allocation5], 4294967168 }
  0x29   :  { %278 = vsyncpa [#allocation4], 1 }
  0x2a   :  { %279 = vsyncpa [#allocation7], 1 }
  0x2b   :  { %280 = vsyncpa [#allocation5], 1 }

</bundles_post_ra>
